<compile_context>
chip_gen: v7x
topology: tpu7x:2x2x1
jax: 0.10.0
libtpu: 0.0.40
codegen_flags: <defaults>
</compile_context>

<pallas_src>
import functools

import numpy as np
import jax
import jax.numpy as jnp
from jax import lax
from jax.experimental import pallas as pl
from jax.experimental.pallas import tpu as pltpu

_GROUP = 32                 # anchors per 128-lane row (32 anchors * 4 coords)
_LANES = 128
_ROW_BYTES = _LANES * 4     # one (1, 128) f32 row


def _bbox_kernel(boxes_ref, deltas_ref, out_ref, *, std4, mean4, add_mean):
    b = boxes_ref[...]       # (tile_rows, 128): [x1 y1 x2 y2]*32 on the lanes
    d = deltas_ref[...]

    # ---- (1,128) per-coordinate constant rows (single-vreg work per step) ----
    lane = lax.broadcasted_iota(jnp.int32, (1, _LANES), 1)
    coord = lane & 3                                   # 0:x1 1:y1 2:x2 3:y2

    def coord_row(v0, v1, v2, v3):
        return jnp.where(coord == 0, jnp.float32(v0),
               jnp.where(coord == 1, jnp.float32(v1),
               jnp.where(coord == 2, jnp.float32(v2), jnp.float32(v3))))

    # std/mean for the centre lanes carry the 2x factor (ctr uses half-sizes).
    std_row = coord_row(2.0 * std4[0], 2.0 * std4[1], std4[2], std4[3])
    sign_row = coord_row(1.0, 1.0, -1.0, -1.0)         # +1 on x1/y1, -1 on x2/y2

    # ---- direction-agnostic lane-partner shuffle: lane i <-> lane i^2 -------
    # Probe the hardware roll convention on one (1,128) row, then select per
    # lane between the two 2-lane rotations.  (Correct under either roll
    # convention; costs one tiny XLU op.)
    probe = pltpu.roll(lane, 2, axis=1)
    use_fwd_row = (probe == (lane ^ 2)).astype(jnp.int32)
    is_lo_row = (coord < 2).astype(jnp.int32)

    use_fwd = jnp.broadcast_to(use_fwd_row, b.shape) != 0
    is_lo = jnp.broadcast_to(is_lo_row, b.shape) != 0

    def partner(x):
        return jnp.where(use_fwd,
                         pltpu.roll(x, 2, axis=1),
                         pltpu.roll(x, _LANES - 2, axis=1))

    # ---- decode ---------------------------------------------------------------
    hb = 0.5 * b                          # 0.5*x1 | 0.5*y1 | 0.5*x2 | 0.5*y2
    hpb = partner(hb)
    ctr = hb + hpb                        # ctr_x / ctr_y on every lane
    hsz = hpb - hb                        # +w/2,+h/2 on x1/y1; -w/2,-h/2 on x2/y2

    dsc = d * std_row                     # 2*std*dx|2*std*dy on lo, std*dw|std*dh on hi
    if add_mean:
        mean_row = coord_row(2.0 * mean4[0], 2.0 * mean4[1], mean4[2], mean4[3])
        dsc = dsc + mean_row

    pred_ctr = ctr + dsc * hsz            # valid on x1/y1 lanes
    pred_half = jnp.exp(dsc) * hsz        # -0.5*pred_w / -0.5*pred_h on x2/y2 lanes

    mixed = jnp.where(is_lo, pred_ctr, pred_half)
    # lo lanes: pred_ctr + (-0.5*pred_size)   hi lanes: pred_ctr + 0.5*pred_size
    out_ref[...] = (partner(mixed) + sign_row * mixed).astype(out_ref.dtype)


def _vmem_capacity_bytes():
    try:
        info = pltpu.get_tpu_info()
        cap = getattr(info, "vmem_capacity_bytes", None)
        if cap:
            return int(cap)
    except Exception:
        pass
    return 64 * 1024 * 1024    # conservative fallback (v7x per-core VMEM)


def _decode_flat(boxes, deltas, mean4, std4):
    """Plain-JAX decode for (M, 4) flat boxes/deltas (the <32-anchor tail)."""
    w = boxes[:, 2] - boxes[:, 0]
    h = boxes[:, 3] - boxes[:, 1]
    cx = boxes[:, 0] + 0.5 * w
    cy = boxes[:, 1] + 0.5 * h
    dx = deltas[:, 0] * std4[0] + mean4[0]
    dy = deltas[:, 1] * std4[1] + mean4[1]
    dw = deltas[:, 2] * std4[2] + mean4[2]
    dh = deltas[:, 3] * std4[3] + mean4[3]
    pcx = cx + dx * w
    pcy = cy + dy * h
    pw = jnp.exp(dw) * w
    ph = jnp.exp(dh) * h
    return jnp.stack([pcx - 0.5 * pw, pcy - 0.5 * ph,
                      pcx + 0.5 * pw, pcy + 0.5 * ph], axis=1)


def bbox_transform(boxes, deltas, mean=None, std=None, max_tile_rows=8192):
    """boxes, deltas: (B, N, 4). Returns decoded boxes (B, N, 4) float32."""
    assert boxes.shape == deltas.shape and boxes.shape[-1] == 4, "expect (B, N, 4)"
    B, N, _ = boxes.shape

    # Kernel assumes f32 lane interleaving (bf16 would change the sublane tiling).
    if boxes.dtype != jnp.float32:
        boxes = boxes.astype(jnp.float32)
    if deltas.dtype != jnp.float32:
        deltas = deltas.astype(jnp.float32)

    mean4 = (np.zeros(4, np.float32) if mean is None
             else np.asarray(mean, np.float32).reshape(4))
    std4 = (np.array([0.1, 0.1, 0.2, 0.2], np.float32) if std is None
            else np.asarray(std, np.float32).reshape(4))

    total = B * N
    bulk = (total // _GROUP) * _GROUP     # anchors handled by the kernel
    rows = bulk // _GROUP                 # 128-lane rows (32 anchors each)

    boxes_flat = boxes.reshape(total, 4)
    deltas_flat = deltas.reshape(total, 4)

    parts = []
    if rows > 0:
        if bulk == total:                 # fully aligned: free contiguous reshape
            boxes_r = boxes_flat.reshape(rows, _LANES)
            deltas_r = deltas_flat.reshape(rows, _LANES)
        else:                             # aligned bulk only; tail handled below
            boxes_r = boxes_flat[:bulk].reshape(rows, _LANES)
            deltas_r = deltas_flat[:bulk].reshape(rows, _LANES)

        # Tile sizing: biggest tile that fits comfortably in this chip's VMEM.
        # Budget ~12 row-sized blocks per tile row: 3 arrays x 2 pipeline
        # buffers plus ~6 full-tile temporaries the compiler may materialise.
        cap = _vmem_capacity_bytes()
        fit_rows = max(8, ((cap // 2) // (12 * _ROW_BYTES)) // 8 * 8)
        tile_cap = max(8, min(int(max_tile_rows), fit_rows))
        if rows <= tile_cap:
            tile_rows = rows              # single full-extent block (any row count)
            grid = (1,)
        else:
            tile_rows = tile_cap          # multiple of 8; last block may be ragged
            grid = (pl.cdiv(rows, tile_rows),)

        block_bytes = tile_rows * _ROW_BYTES
        vmem_limit = int(max(32 * 1024 * 1024,
                             min(cap - 8 * 1024 * 1024,
                                 12 * block_bytes + 8 * 1024 * 1024)))

        kernel = functools.partial(
            _bbox_kernel,
            std4=tuple(float(v) for v in std4),
            mean4=tuple(float(v) for v in mean4),
            add_mean=bool(np.any(mean4 != 0.0)))

        out_r = pl.pallas_call(
            kernel,
            out_shape=jax.ShapeDtypeStruct((rows, _LANES), jnp.float32),
            grid=grid,
            in_specs=[pl.BlockSpec((tile_rows, _LANES), lambda r: (r, 0)),
                      pl.BlockSpec((tile_rows, _LANES), lambda r: (r, 0))],
            out_specs=pl.BlockSpec((tile_rows, _LANES), lambda r: (r, 0)),
            compiler_params=pltpu.CompilerParams(
                dimension_semantics=("parallel",),
                vmem_limit_bytes=vmem_limit),
        )(boxes_r, deltas_r)
        parts.append(out_r.reshape(bulk, 4))

    if bulk != total:                     # <=31 leftover anchors: plain JAX
        parts.append(_decode_flat(boxes_flat[bulk:], deltas_flat[bulk:], mean4, std4))

    out_flat = parts[0] if len(parts) == 1 else jnp.concatenate(parts, axis=0)
    return out_flat.reshape(B, N, 4)


def _reference(boxes, deltas, mean, std):
    widths = boxes[:, :, 2] - boxes[:, :, 0]
    heights = boxes[:, :, 3] - boxes[:, :, 1]
    ctr_x = boxes[:, :, 0] + 0.5 * widths
    ctr_y = boxes[:, :, 1] + 0.5 * heights
    dx = deltas[:, :, 0] * std[0] + mean[0]
    dy = deltas[:, :, 1] * std[1] + mean[1]
    dw = deltas[:, :, 2] * std[2] + mean[2]
    dh = deltas[:, :, 3] * std[3] + mean[3]
    pred_ctr_x = ctr_x + dx * widths
    pred_ctr_y = ctr_y + dy * heights
    pred_w = jnp.exp(dw) * widths
    pred_h = jnp.exp(dh) * heights
    return jnp.stack([pred_ctr_x - 0.5 * pred_w,
                      pred_ctr_y - 0.5 * pred_h,
                      pred_ctr_x + 0.5 * pred_w,
                      pred_ctr_y + 0.5 * pred_h], axis=2)


if __name__ == "__main__":
    key = jax.random.PRNGKey(0)
    k1, k2, k3 = jax.random.split(key, 3)

    B, Nmax = 2, 352
    xy = jax.random.uniform(k1, (B, Nmax, 2), jnp.float32, minval=0.0, maxval=100.0)
    wh = jax.random.uniform(k2, (B, Nmax, 2), jnp.float32, minval=4.0, maxval=40.0)
    boxes_all = jnp.concatenate([xy, xy + wh], axis=-1)     # valid (x1,y1,x2,y2)
    deltas_all = jax.random.normal(k3, (B, Nmax, 4), jnp.float32)

    mean = jnp.array([0.0, 0.0, 0.0, 0.0], jnp.float32)
    std = jnp.array([0.1, 0.1, 0.2, 0.2], jnp.float32)

    # 1) aligned anchor count (B*N % 32 == 0), single full-extent tile.
    b1, d1 = boxes_all[:, :256], deltas_all[:, :256]
    pred1 = jax.block_until_ready(bbox_transform(b1, d1, mean, std))
    ref1 = _reference(b1, d1, mean, std)
    assert pred1.shape == (B, 256, 4)
    assert jnp.allclose(pred1, ref1, atol=1e-3, rtol=1e-4)

    # 2) multi-tile grid with a ragged (masked) last block: 704 anchors -> 22
    #    rows, tile_rows=8 -> grid of 3.
    pred2 = jax.block_until_ready(
        bbox_transform(boxes_all, deltas_all, mean, std, max_tile_rows=8))
    ref2 = _reference(boxes_all, deltas_all, mean, std)
    assert pred2.shape == (B, Nmax, 4)
    assert jnp.allclose(pred2, ref2, atol=1e-3, rtol=1e-4)

    # 3) non-multiple-of-32 anchor count: kernel on the aligned bulk, plain-JAX
    #    tail, default mean/std (mean==0 specialisation path).
    b3, d3 = boxes_all[:, :100], deltas_all[:, :100]
    pred3 = jax.block_until_ready(bbox_transform(b3, d3))
    ref3 = _reference(b3, d3, mean, std)
    assert pred3.shape == (B, 100, 4)
    assert jnp.allclose(pred3, ref3, atol=1e-3, rtol=1e-4)

    print("KERNEL_OK")
</pallas_src>

<mosaic_0001>
module attributes {stable_mosaic.version = 11 : i64} {
  func.func @_bbox_kernel(%arg0: i32, %arg1: memref<16x128xf32, #tpu.memory_space<vmem>>, %arg2: memref<16x128xf32, #tpu.memory_space<vmem>>, %arg3: memref<16x128xf32, #tpu.memory_space<vmem>>) attributes {dimension_semantics = [#tpu.dimension_semantics<parallel>], iteration_bounds = array<i64: 1>, scalar_prefetch = 0 : i64, scratch_operands = 0 : i64, tpu.core_type = #tpu.core_type<tc>, window_params = [{transform_indices = @transform_0, window_bounds = array<i64: 16, 128>}, {transform_indices = @transform_1, window_bounds = array<i64: 16, 128>}, {transform_indices = @transform_2, window_bounds = array<i64: 16, 128>}]} {
    %c0 = arith.constant 0 : index
    %c0_0 = arith.constant 0 : index
    %0 = vector.load %arg1[%c0, %c0_0] : memref<16x128xf32, #tpu.memory_space<vmem>>, vector<16x128xf32>
    %c0_1 = arith.constant 0 : index
    %c0_2 = arith.constant 0 : index
    %1 = vector.load %arg2[%c0_1, %c0_2] : memref<16x128xf32, #tpu.memory_space<vmem>>, vector<16x128xf32>
    %2 = tpu.iota {dimensions = array<i32: 1>} : vector<1x128xi32>
    %c3_i32 = arith.constant 3 : i32
    %3 = vector.broadcast %c3_i32 : i32 to vector<1x128xi32>
    %4 = arith.andi %2, %3 : vector<1x128xi32>
    %c0_i32 = arith.constant 0 : i32
    %5 = vector.broadcast %c0_i32 : i32 to vector<1x128xi32>
    %6 = arith.cmpi eq, %4, %5 : vector<1x128xi32>
    %c1_i32 = arith.constant 1 : i32
    %7 = vector.broadcast %c1_i32 : i32 to vector<1x128xi32>
    %8 = arith.cmpi eq, %4, %7 : vector<1x128xi32>
    %c2_i32 = arith.constant 2 : i32
    %9 = vector.broadcast %c2_i32 : i32 to vector<1x128xi32>
    %10 = arith.cmpi eq, %4, %9 : vector<1x128xi32>
    %cst = arith.constant 2.000000e-01 : f32
    %cst_3 = arith.constant 2.000000e-01 : f32
    %11 = vector.broadcast %cst : f32 to vector<1x128xf32>
    %12 = vector.broadcast %cst_3 : f32 to vector<1x128xf32>
    %13 = arith.select %10, %11, %12 : vector<1x128xi1>, vector<1x128xf32>
    %cst_4 = arith.constant 2.000000e-01 : f32
    %14 = vector.broadcast %cst_4 : f32 to vector<1x128xf32>
    %15 = arith.select %8, %14, %13 : vector<1x128xi1>, vector<1x128xf32>
    %cst_5 = arith.constant 2.000000e-01 : f32
    %16 = vector.broadcast %cst_5 : f32 to vector<1x128xf32>
    %17 = arith.select %6, %16, %15 : vector<1x128xi1>, vector<1x128xf32>
    %c0_i32_6 = arith.constant 0 : i32
    %18 = vector.broadcast %c0_i32_6 : i32 to vector<1x128xi32>
    %19 = arith.cmpi eq, %4, %18 : vector<1x128xi32>
    %c1_i32_7 = arith.constant 1 : i32
    %20 = vector.broadcast %c1_i32_7 : i32 to vector<1x128xi32>
    %21 = arith.cmpi eq, %4, %20 : vector<1x128xi32>
    %c2_i32_8 = arith.constant 2 : i32
    %22 = vector.broadcast %c2_i32_8 : i32 to vector<1x128xi32>
    %23 = arith.cmpi eq, %4, %22 : vector<1x128xi32>
    %cst_9 = arith.constant -1.000000e+00 : f32
    %cst_10 = arith.constant -1.000000e+00 : f32
    %24 = vector.broadcast %cst_9 : f32 to vector<1x128xf32>
    %25 = vector.broadcast %cst_10 : f32 to vector<1x128xf32>
    %26 = arith.select %23, %24, %25 : vector<1x128xi1>, vector<1x128xf32>
    %cst_11 = arith.constant 1.000000e+00 : f32
    %27 = vector.broadcast %cst_11 : f32 to vector<1x128xf32>
    %28 = arith.select %21, %27, %26 : vector<1x128xi1>, vector<1x128xf32>
    %cst_12 = arith.constant 1.000000e+00 : f32
    %29 = vector.broadcast %cst_12 : f32 to vector<1x128xf32>
    %30 = arith.select %19, %29, %28 : vector<1x128xi1>, vector<1x128xf32>
    %c2_i32_13 = arith.constant 2 : i32
    %31 = tpu.dynamic_rotate %2 by %c2_i32_13 dim 1 : vector<1x128xi32>, i32 -> vector<1x128xi32>
    %c2_i32_14 = arith.constant 2 : i32
    %32 = vector.broadcast %c2_i32_14 : i32 to vector<1x128xi32>
    %33 = arith.xori %2, %32 : vector<1x128xi32>
    %34 = arith.cmpi eq, %31, %33 : vector<1x128xi32>
    %35 = arith.extui %34 : vector<1x128xi1> to vector<1x128xi32>
    %c2_i32_15 = arith.constant 2 : i32
    %36 = vector.broadcast %c2_i32_15 : i32 to vector<1x128xi32>
    %37 = arith.cmpi slt, %4, %36 : vector<1x128xi32>
    %38 = arith.extui %37 : vector<1x128xi1> to vector<1x128xi32>
    %39 = vector.shape_cast %35 : vector<1x128xi32> to vector<1x128xi32>
    %40 = vector.broadcast %39 : vector<1x128xi32> to vector<16x128xi32>
    %c0_i32_16 = arith.constant 0 : i32
    %41 = vector.broadcast %c0_i32_16 : i32 to vector<16x128xi32>
    %42 = arith.cmpi ne, %40, %41 : vector<16x128xi32>
    %43 = vector.shape_cast %38 : vector<1x128xi32> to vector<1x128xi32>
    %44 = vector.broadcast %43 : vector<1x128xi32> to vector<16x128xi32>
    %c0_i32_17 = arith.constant 0 : i32
    %45 = vector.broadcast %c0_i32_17 : i32 to vector<16x128xi32>
    %46 = arith.cmpi ne, %44, %45 : vector<16x128xi32>
    %cst_18 = arith.constant 5.000000e-01 : f32
    %47 = vector.broadcast %cst_18 : f32 to vector<16x128xf32>
    %48 = arith.mulf %47, %0 : vector<16x128xf32>
    %c2_i32_19 = arith.constant 2 : i32
    %49 = tpu.dynamic_rotate %48 by %c2_i32_19 dim 1 : vector<16x128xf32>, i32 -> vector<16x128xf32>
    %c126_i32 = arith.constant 126 : i32
    %50 = tpu.dynamic_rotate %48 by %c126_i32 dim 1 : vector<16x128xf32>, i32 -> vector<16x128xf32>
    %51 = arith.select %42, %49, %50 : vector<16x128xi1>, vector<16x128xf32>
    %52 = arith.addf %48, %51 : vector<16x128xf32>
    %53 = arith.subf %51, %48 : vector<16x128xf32>
    %54 = vector.broadcast %17 : vector<1x128xf32> to vector<16x128xf32>
    %55 = arith.mulf %1, %54 : vector<16x128xf32>
    %56 = arith.mulf %55, %53 : vector<16x128xf32>
    %57 = arith.addf %52, %56 : vector<16x128xf32>
    %58 = math.exp %55 : vector<16x128xf32>
    %59 = arith.mulf %58, %53 : vector<16x128xf32>
    %60 = arith.select %46, %57, %59 : vector<16x128xi1>, vector<16x128xf32>
    %c2_i32_20 = arith.constant 2 : i32
    %61 = tpu.dynamic_rotate %60 by %c2_i32_20 dim 1 : vector<16x128xf32>, i32 -> vector<16x128xf32>
    %c126_i32_21 = arith.constant 126 : i32
    %62 = tpu.dynamic_rotate %60 by %c126_i32_21 dim 1 : vector<16x128xf32>, i32 -> vector<16x128xf32>
    %63 = arith.select %42, %61, %62 : vector<16x128xi1>, vector<16x128xf32>
    %64 = vector.broadcast %30 : vector<1x128xf32> to vector<16x128xf32>
    %65 = arith.mulf %64, %60 : vector<16x128xf32>
    %66 = arith.addf %63, %65 : vector<16x128xf32>
    %c0_22 = arith.constant 0 : index
    %c0_23 = arith.constant 0 : index
    %67 = vector.load %arg3[%c0_22, %c0_23] : memref<16x128xf32, #tpu.memory_space<vmem>>, vector<16x128xf32>
    tpu.vector_store %arg3[%c0_22, %c0_23], %66 {strides = array<i32>} : memref<16x128xf32, #tpu.memory_space<vmem>>, vector<16x128xf32>,
    return
  }
  func.func @transform_0(%arg0: i32) -> (i32, i32) {
    %c0_i32 = arith.constant 0 : i32
    %c0_i32_0 = arith.constant 0 : i32
    return %arg0, %c0_i32 : i32, i32
  }
  func.func @transform_1(%arg0: i32) -> (i32, i32) {
    %c0_i32 = arith.constant 0 : i32
    %c0_i32_0 = arith.constant 0 : i32
    return %arg0, %c0_i32 : i32, i32
  }
  func.func @transform_2(%arg0: i32) -> (i32, i32) {
    %c0_i32 = arith.constant 0 : i32
    %c0_i32_0 = arith.constant 0 : i32
    return %arg0, %c0_i32 : i32, i32
  }
}

</mosaic_0001>

<bundles_post_ra>
// kernel: tpu_custom_call.1
= control target key start
LH: loop header
LB: loop body
LE: loop exit
PB: predicated region body
PF: predicated region fallthrough
CT: control target
= control target key end

     0   :  { %7 = vsyncpa [#allocation3], 0  ;;  %s293_s0 = inlined_call_operand.hbm [shape: f32[16,128], index: 0, kind: input, shape index: {}]   ;;  %s294_s1 = inlined_call_operand.hbm [shape: f32[16,128], index: 1, kind: input, shape index: {}]   ;;  %s295_s2 = inlined_call_operand.hbm [shape: f32[16,128], index: 2, kind: output, shape index: {}]  }
   0x1   :  { %8 = vsyncpa [#allocation6], 0 }
   0x2   :  { %9 = vsyncpa [#allocation4], 0  ;;  %s211_s9 = smov [#allocation2]   ;;  %s139_s13 = scalar_lea.hbm %s293_s0, 256 }
   0x3   :  { %s15_s10 = sshll.u32 %s211_s9, 4  ;;  %p140_p0 = scmp.ne.s32.totalorder %s293_s0, %s139_s13  ;;  %s16_s10 = int_to_ptr.vmem [resolvable:$true] %s15_s10 }
   0x4   :  { %p143_p1 = scmp.lt.u32.totalorder %s139_s13, %s293_s0 }
   0x6   :  { %p145_p2 = pnand %p143_p1, %p140_p0 }
   0x8   :  { %148 = shalt.err (!%p145_p2)
}
   0x9   :  { %s149_s18 = scalar_lea.vmem %s16_s10, 256  ;;  %p154_p4 = scmp.lt.s32.totalorder %s16_s10, %s16_s10 }
   0xa   :  { %p150_p3 = scmp.ne.s32.totalorder %s16_s10, %s149_s18  ;;  %p155_p5 = scmp.lt.s32.totalorder %s149_s18, %s149_s18 }
   0xc   :  { %p156_p6 = por %p155_p5, %p154_p4 }
   0xe   :  { %p157_p7 = pnand %p156_p6, %p150_p3 }
  0x10   :  { %160 = shalt.err (!%p157_p7)
}
  0x11   :  { %s212_s19 = smov 128   ;;  %s213_s20 = smov 8  }
  0x12   :  { %21 = dma.hbm_to_vmem [thread:$0]  %s293_s0, 256, %s16_s10, [#allocation3], %s212_s19, %s212_s19, %s213_s20  }
  0x13   :  { %s214_s23 = smov [#allocation5]   ;;  %s161_s27 = scalar_lea.hbm %s294_s1, 256 }
  0x14   :  { %s27_s24 = sshll.u32 %s214_s23, 4  ;;  %p162_p8 = scmp.ne.s32.totalorder %s294_s1, %s161_s27  ;;  %s28_s24 = int_to_ptr.vmem [resolvable:$true] %s27_s24 }
  0x15   :  { %p165_p9 = scmp.lt.u32.totalorder %s161_s27, %s294_s1 }
  0x17   :  { %p167_p10 = pnand %p165_p9, %p162_p8 }
  0x19   :  { %170 = shalt.err (!%p167_p10)
}
  0x1a   :  { %s171_s4 = scalar_lea.vmem %s28_s24, 256  ;;  %p176_p12 = scmp.lt.s32.totalorder %s28_s24, %s28_s24 }
  0x1b   :  { %p172_p11 = scmp.ne.s32.totalorder %s28_s24, %s171_s4  ;;  %p177_p13 = scmp.lt.s32.totalorder %s171_s4, %s171_s4 }
  0x1d   :  { %p178_p0 = por %p177_p13, %p176_p12 }
  0x1f   :  { %p179_p1 = pnand %p178_p0, %p172_p11 }
  0x21   :  { %182 = shalt.err (!%p179_p1)
}
  0x22   :  { %33 = dma.hbm_to_vmem [thread:$0]  %s294_s1, 256, %s28_s24, [#allocation6], %s212_s19, %s212_s19, %s213_s20  }
  0x23   :  { %205 = dma.done.wait [#allocation3], 256  }
  0x24   :  { %206 = vsyncadd [#allocation3], 4294967040 }
  0x25   :  { %207 = dma.done.wait [#allocation6], 256  }
  0x26   :  { %208 = vsyncadd [#allocation6], 4294967040  ;;  %v44_v0 = vlaneseq  ;;  %s215_s6 = smov 2   ;;  %v41_v2 = vld [vmem:[#allocation2 + $0x8] sm:$0xff]  ;;  %v40_v3 = vld [vmem:[#allocation2] sm:$0xff]  ;;  %s216_s7 = smov 126  }
  0x27   :  { %v63_v4 = vmul.f32 0.5, %v41_v2  ;;  %v62_v5 = vmul.f32 0.5, %v40_v3  ;;  %v42_v6 = vld [vmem:[#allocation5] sm:$0xff]  ;;  %v43_v7 = vld [vmem:[#allocation5 + $0x8] sm:$0xff]  ;;  %v217_v16 = vmov 0   ;;  %v218_v29 = vmov -1.0  }
  0x28   :  { %v45_v1 = vand.u32 127, %v44_v0  ;;  %v78_v8 = vmul.f32 0.2, %v42_v6  ;;  %v58_v9 = vshrl.u32 %v44_v0, 7  ;;  %v79_v10 = vmul.f32 0.2, %v43_v7 }
  0x29   :  { %66 = vrot.lane.b32.xlu1 %v63_v4, %s215_s6  ;;  %s219_s1 = smov [#allocation7]  }
  0x2a   :  { %51 = vrot.lane.b32.xlu0 %v45_v1, %s215_s6  ;;  %v53_v11 = vxor.u32 2, %v45_v1  ;;  %v84_v12 = vmul.f32 1.442695, %v78_v8  ;;  %v59_v13 = vsub.s32 0, %v58_v9  ;;  %v86_v14 = vmul.f32 1.442695, %v79_v10 }
  0x2b   :  { %v46_v19 = vand.u32 3, %v45_v1  ;;  %s113_s8 = sshll.u32 %s219_s1, 4  ;;  %s114_s8 = int_to_ptr.vmem [resolvable:$true] %s113_s8 }
  0x2c   :  { %135 = vpow2.f32 %v84_v12  ;;  %s183_s9 = scalar_lea.vmem %s114_s8, 256  ;;  %p188_p3 = scmp.lt.s32.totalorder %s114_s8, %s114_s8 }
  0x2d   :  { %68 = vrot.lane.b32.xlu1 %v62_v5, %s216_s7  ;;  %137 = vpow2.f32 %v86_v14  ;;  %vm48_vm1 = vcmp.eq.s32.totalorder %v46_v19, 1  ;;  %vm47_vm3 = vcmp.eq.s32.totalorder %v46_v19, 0  ;;  %vm56_vm4 = vcmp.lt.s32.totalorder %v46_v19, 2  ;;  %p184_p2 = scmp.ne.s32.totalorder %s114_s8, %s183_s9  ;;  %p189_p4 = scmp.lt.s32.totalorder %s183_s9, %s183_s9 }
  0x2e   :  { %64 = vrot.lane.b32.xlu0 %v62_v5, %s215_s6  ;;  %v49_v30 = vsel %vm48_vm1, 1.0, %v218_v29 }
  0x2f   :  { %v50_v36 = vsel %vm47_vm3, 1.0, %v49_v30  ;;  %p190_p5 = por %p189_p4, %p188_p3 }
  0x31   :  { %p191_p6 = pnand %p190_p5, %p184_p2 }
  0x32   :  { %70 = vrot.lane.b32.xlu0 %v63_v4, %s216_s7 }
  0x36   :  { %v136_v26 = vpop.eup %135 }
  0x37   :  { %v138_v31 = vpop.eup %137 }
  0x9b   :  { %v67_v20 = vpop.permute.xlu1 %66 }
  0x9c   :  { %v52_v15 = vpop.permute.xlu0 %51 }
  0x9d   :  { %vm54_vm0 = vcmp.eq.s32.totalorder %v52_v15, %v53_v11 }
  0x9e   :  { %v55_v17 = vsel %vm54_vm0, 1, %v217_v16 }
  0x9f   :  { %v60_v18 = vrot.slane %v55_v17, %v59_v13  ;;  %v69_v22 = vpop.permute.xlu1 %68 }
  0xa0   :  { %v65_v21 = vpop.permute.xlu0 %64 }
  0xa1   :  { %vm61_vm2 = vcmp.ne.s32.totalorder %v60_v18, 0 }
  0xa2   :  { %v72_v24 = vsel %vm61_vm2, %v65_v21, %v69_v22 }
  0xa3   :  { %v76_v27 = vsub.f32 %v72_v24, %v62_v5  ;;  %v74_v32 = vadd.f32 %v72_v24, %v62_v5 }
  0xa4   :  { %v71_v23 = vpop.permute.xlu0 %70 }
  0xa5   :  { %v73_v25 = vsel %vm61_vm2, %v67_v20, %v71_v23  ;;  %v80_v33 = vmul.f32 %v78_v8, %v76_v27  ;;  %v88_v38 = vmul.f32 %v136_v26, %v76_v27 }
  0xa6   :  { %v77_v28 = vsub.f32 %v73_v25, %v63_v4  ;;  %v75_v34 = vadd.f32 %v73_v25, %v63_v4 }
  0xa7   :  { %v82_v37 = vadd.f32 %v80_v33, %v74_v32 }
  0xa8   :  { %v81_v35 = vmul.f32 %v79_v10, %v77_v28  ;;  %v89_v40 = vmul.f32 %v138_v31, %v77_v28 }
  0xa9   :  { %v90_v41 = vsel %vm56_vm4, %v82_v37, %v88_v38 }
  0xaa   :  { %v83_v39 = vadd.f32 %v81_v35, %v75_v34  ;;  %92 = vrot.lane.b32.xlu1 %v90_v41, %s215_s6  ;;  %v102_v43 = vmul.f32 %v90_v41, %v50_v36 }
  0xac   :  { %v91_v42 = vsel %vm56_vm4, %v83_v39, %v89_v40 }
  0xad   :  { %94 = vrot.lane.b32.xlu0 %v91_v42, %s215_s6  ;;  %v103_v44 = vmul.f32 %v91_v42, %v50_v36 }
  0xae   :  { %96 = vrot.lane.b32.xlu1 %v90_v41, %s216_s7 }
  0xb1   :  { %98 = vrot.lane.b32.xlu0 %v91_v42, %s216_s7 }
 0x11c   :  { %v93_v45 = vpop.permute.xlu1 %92 }
 0x11f   :  { %v95_v46 = vpop.permute.xlu0 %94 }
 0x120   :  { %v97_v47 = vpop.permute.xlu1 %96 }
 0x121   :  { %v100_v49 = vsel %vm61_vm2, %v93_v45, %v97_v47 }
 0x122   :  { %v104_v51 = vadd.f32 %v102_v43, %v100_v49 }
 0x123   :  { %v99_v48 = vpop.permute.xlu0 %98 }
 0x124   :  { %v101_v50 = vsel %vm61_vm2, %v95_v46, %v99_v48  ;;  %106 = vst [vmem:[#allocation7] sm:$0xff] %v104_v51 }
 0x125   :  { %v105_v52 = vadd.f32 %v103_v44, %v101_v50 }
 0x127   :  { %107 = vst [vmem:[#allocation7 + $0x8] sm:$0xff] %v105_v52 }
 0x128   :  { %194 = shalt.err (!%p191_p6)
}
 0x129   :  { %s195_s12 = scalar_lea.hbm %s295_s2, 256 }
 0x12a   :  { %p196_p7 = scmp.ne.s32.totalorder %s295_s2, %s195_s12  ;;  %p199_p8 = scmp.lt.u32.totalorder %s195_s12, %s295_s2 }
 0x12c   :  { %p201_p9 = pnand %p199_p8, %p196_p7 }
 0x12e   :  { %204 = shalt.err (!%p201_p9)
}
 0x12f   :  { %119 = dma.vmem_to_hbm [thread:$0]  %s114_s8, 256, %s295_s2, [#allocation4], %s212_s19, %s212_s19, %s213_s20  }
 0x130   :  { %209 = dma.done.wait [#allocation4], 256  }
 0x131   :  { %210 = vsyncadd [#allocation4], 4294967040 }
 0x132   :  { %123 = vsyncpa [#allocation3], 1 }
 0x133   :  { %124 = vsyncpa [#allocation6], 1 }
 0x134   :  { %125 = vsyncpa [#allocation4], 1 }

</bundles_post_ra>
